<compile_context>
chip_gen: v7x
topology: tpu7x:2x2x1
jax: 0.10.0
libtpu: 0.0.40
codegen_flags: <defaults>
</compile_context>

<pallas_src>
import functools

import jax
import jax.numpy as jnp
from jax.experimental import pallas as pl
from jax.experimental.pallas import tpu as pltpu


def _round_up(a, b):
    return ((a + b - 1) // b) * b


def _feature_update_kernel(xp_ref, lo_ref, hi_ref, w_ref, d_ref, o_ref, *,
                           nodes_per_row):
    # xp_ref: [rows, P*C]   P nodes packed per row (row-major view of x)
    # lo_ref: [1, P*B]      lo[j*B+b] = graph_start[b] - j   (int32, resident)
    # hi_ref: [1, P*B]      hi[j*B+b] = graph_end[b]   - j   (int32, resident)
    # w_ref:  [P*C, P*O]    block-diagonal copies of W_x     (resident)
    # d_ref:  [P*B, P*O]    block-diagonal copies of d_proj  (f32, resident)
    # o_ref:  [rows, P*O]   lane-dense packed output
    rows = xp_ref.shape[0]
    row0 = pl.program_id(0) * rows
    # node_base[r, 0] = P * (global packed-row index); node (r, j) = node_base + j
    node_base = nodes_per_row * (
        jax.lax.broadcasted_iota(jnp.int32, (rows, 1), 0) + row0)
    # onehot[r, j*B + b] == 1  iff node (P*r + j) belongs to graph b.
    onehot = ((node_base >= lo_ref[...]) & (node_base < hi_ref[...])
              ).astype(jnp.float32)

    acc = jnp.dot(xp_ref[...], w_ref[...], preferred_element_type=jnp.float32)
    acc = acc + jnp.dot(onehot, d_ref[...], preferred_element_type=jnp.float32)
    o_ref[...] = jnp.maximum(acc, 0.0).astype(o_ref.dtype)


def feature_update_layer(x, diagram_vector, batch, weight, bias, *,
                         tile_nodes=8192, out_dtype=None):
    """x: [N, C], diagram_vector: [B, D], batch: [N] int32,
    weight: [C + D, O] (transposed vs. PyTorch), bias: [O].  Returns [N, O]."""
    N, C = x.shape
    B, D = diagram_vector.shape
    O = weight.shape[1]
    assert weight.shape[0] == C + D
    out_dtype = x.dtype if out_dtype is None else out_dtype

    # Nodes packed per output row so stores are 128-lane dense.
    if O % 128 == 0:
        P = 1                      # already lane-dense
    elif 128 % O == 0:
        P = 128 // O
    else:
        P = 1                      # TODO(synk): non-divisor O keeps masked stores.

    # ---- weight split: repeated/x_cat never materialized in HBM -------------
    w_x = weight[:C].astype(x.dtype)                                # [C, O]
    d_proj = (diagram_vector.astype(jnp.float32)
              @ weight[C:].astype(jnp.float32)
              + bias.astype(jnp.float32))                           # [B, O] f32

    # Block-diagonal copies so P nodes are processed per packed row.
    w_bd = jnp.kron(jnp.eye(P, dtype=w_x.dtype), w_x)               # [P*C, P*O]
    d_bd = jnp.kron(jnp.eye(P, dtype=jnp.float32), d_proj)          # [P*B, P*O]

    # ---- segment boundaries (positional: == bincount + repeat_interleave) ---
    counts = jnp.bincount(batch, length=B)
    ends = jnp.cumsum(counts).astype(jnp.int32)
    starts = ends - counts.astype(jnp.int32)
    phase = jnp.arange(P, dtype=jnp.int32)[:, None]                 # [P, 1]
    lo = (starts[None, :] - phase).reshape(1, P * B)                # [1, P*B]
    hi = (ends[None, :] - phase).reshape(1, P * B)                  # [1, P*B]

    # ---- pack P nodes per row (row-major bitcast views) ---------------------
    n_pad = _round_up(N, P)
    if n_pad != N:                 # only when N % P != 0 (avoided in common case)
        x = jnp.pad(x, ((0, n_pad - N), (0, 0)))
    rows_total = n_pad // P
    xp = x.reshape(rows_total, P * C)

    # ---- tile sizing (amortize per-step overhead, keep both v7x cores busy) -
    max_rows = max(8, tile_nodes // P)
    if rows_total <= max_rows:
        tile_rows = (_round_up(pl.cdiv(rows_total, 2), 8)
                     if rows_total > 8 else rows_total)
    else:
        tile_rows = _round_up(max_rows, 8)
    grid = (pl.cdiv(rows_total, tile_rows),)   # ragged last block handled by Pallas

    x_item = jnp.dtype(x.dtype).itemsize
    o_item = jnp.dtype(out_dtype).itemsize
    cost = pl.CostEstimate(
        flops=2 * rows_total * (P * C + P * B) * (P * O),
        transcendentals=0,
        bytes_accessed=(rows_total * P * C * x_item          # xp (streamed)
                        + 2 * P * B * 4                      # lo/hi
                        + (P * C) * (P * O) * x_item         # w_bd
                        + (P * B) * (P * O) * 4              # d_bd
                        + rows_total * P * O * o_item))      # out

    kernel = functools.partial(_feature_update_kernel, nodes_per_row=P)
    out_packed = pl.pallas_call(
        kernel,
        out_shape=jax.ShapeDtypeStruct((rows_total, P * O), out_dtype),
        grid_spec=pl.GridSpec(
            grid=grid,
            in_specs=[
                pl.BlockSpec((tile_rows, P * C), lambda i: (i, 0)),  # xp: streamed
                pl.BlockSpec((1, P * B), lambda i: (0, 0)),          # lo: resident
                pl.BlockSpec((1, P * B), lambda i: (0, 0)),          # hi: resident
                pl.BlockSpec((P * C, P * O), lambda i: (0, 0)),      # w_bd: resident
                pl.BlockSpec((P * B, P * O), lambda i: (0, 0)),      # d_bd: resident
            ],
            out_specs=pl.BlockSpec((tile_rows, P * O), lambda i: (i, 0)),
        ),
        compiler_params=pltpu.CompilerParams(
            dimension_semantics=("parallel",)),
        cost_estimate=cost,
    )(xp, lo, hi, w_bd, d_bd)

    out = out_packed.reshape(n_pad, O)                        # bitcast view back
    return out if n_pad == N else out[:N]


def _reference(x, diagram_vector, batch, weight, bias):
    B = diagram_vector.shape[0]
    counts = jnp.bincount(batch, length=B)
    idx = jnp.repeat(jnp.arange(B), counts, total_repeat_length=x.shape[0])
    x_cat = jnp.concatenate([x, diagram_vector[idx]], axis=-1)
    return jax.nn.relu(x_cat @ weight + bias)


if __name__ == "__main__":
    key = jax.random.PRNGKey(0)

    # Small shapes consistent with the module.
    in_channels = 8
    diagram_vector_size = 8
    out_channels = 32
    counts = (10, 6)                 # uneven per-graph counts -> real gather
    num_graphs = len(counts)
    N = sum(counts)

    k_x, k_d, k_w, k_b = jax.random.split(key, 4)
    x = jax.random.normal(k_x, (N, in_channels), dtype=jnp.float32)
    diagram_vector = jax.random.normal(
        k_d, (num_graphs, diagram_vector_size), dtype=jnp.float32)
    batch = jnp.concatenate(
        [jnp.full((c,), g, dtype=jnp.int32) for g, c in enumerate(counts)])

    # Deterministic "Linear" parameters (stored as [C_in + D, C_out]).
    fan_in = in_channels + diagram_vector_size
    bound = 1.0 / jnp.sqrt(fan_in)
    weight = jax.random.uniform(
        k_w, (fan_in, out_channels), minval=-bound, maxval=bound,
        dtype=jnp.float32)
    bias = jax.random.uniform(
        k_b, (out_channels,), minval=-bound, maxval=bound, dtype=jnp.float32)

    out = feature_update_layer(x, diagram_vector, batch, weight, bias)
    out = jax.block_until_ready(out)

    ref = _reference(x, diagram_vector, batch, weight, bias)
    assert out.shape == (N, out_channels)
    assert jnp.allclose(out, ref, atol=1e-5, rtol=1e-5), \
        float(jnp.max(jnp.abs(out - ref)))

    print("KERNEL_OK")
</pallas_src>

<mosaic_0001>
module attributes {stable_mosaic.version = 11 : i64} {
  func.func @_feature_update_kernel(%arg0: i32, %arg1: memref<4x32xf32, #tpu.memory_space<vmem>>, %arg2: memref<1x8xi32, #tpu.memory_space<vmem>>, %arg3: memref<1x8xi32, #tpu.memory_space<vmem>>, %arg4: memref<32x128xf32, #tpu.memory_space<vmem>>, %arg5: memref<8x128xf32, #tpu.memory_space<vmem>>, %arg6: memref<4x128xf32, #tpu.memory_space<vmem>>) attributes {dimension_semantics = [#tpu.dimension_semantics<parallel>], iteration_bounds = array<i64: 1>, scalar_prefetch = 0 : i64, scratch_operands = 0 : i64, tpu.core_type = #tpu.core_type<tc>, window_params = [{transform_indices = @transform_0, window_bounds = array<i64: 4, 32>}, {pipeline_mode = #tpu.pipeline_mode<synchronous>, transform_indices = @transform_1, window_bounds = array<i64: 1, 8>}, {pipeline_mode = #tpu.pipeline_mode<synchronous>, transform_indices = @transform_2, window_bounds = array<i64: 1, 8>}, {pipeline_mode = #tpu.pipeline_mode<synchronous>, transform_indices = @transform_3, window_bounds = array<i64: 32, 128>}, {pipeline_mode = #tpu.pipeline_mode<synchronous>, transform_indices = @transform_4, window_bounds = array<i64: 8, 128>}, {transform_indices = @transform_5, window_bounds = array<i64: 4, 128>}]} {
    %c4_i32 = arith.constant 4 : i32
    %0 = arith.muli %arg0, %c4_i32 : i32
    %1 = tpu.iota {dimensions = array<i32: 0>} : vector<4x1xi32>
    %2 = vector.broadcast %0 : i32 to vector<4x1xi32>
    %3 = arith.addi %1, %2 : vector<4x1xi32>
    %c4_i32_0 = arith.constant 4 : i32
    %4 = vector.broadcast %c4_i32_0 : i32 to vector<4x1xi32>
    %5 = arith.muli %4, %3 : vector<4x1xi32>
    %c0 = arith.constant 0 : index
    %c0_1 = arith.constant 0 : index
    %6 = vector.load %arg2[%c0, %c0_1] : memref<1x8xi32, #tpu.memory_space<vmem>>, vector<1x8xi32>
    %7 = vector.broadcast %5 : vector<4x1xi32> to vector<4x8xi32>
    %8 = vector.broadcast %6 : vector<1x8xi32> to vector<4x8xi32>
    %9 = arith.cmpi sge, %7, %8 : vector<4x8xi32>
    %c0_2 = arith.constant 0 : index
    %c0_3 = arith.constant 0 : index
    %10 = vector.load %arg3[%c0_2, %c0_3] : memref<1x8xi32, #tpu.memory_space<vmem>>, vector<1x8xi32>
    %11 = vector.broadcast %5 : vector<4x1xi32> to vector<4x8xi32>
    %12 = vector.broadcast %10 : vector<1x8xi32> to vector<4x8xi32>
    %13 = arith.cmpi slt, %11, %12 : vector<4x8xi32>
    %14 = arith.andi %9, %13 : vector<4x8xi1>
    %15 = arith.extui %14 : vector<4x8xi1> to vector<4x8xi32>
    %16 = arith.sitofp %15 : vector<4x8xi32> to vector<4x8xf32>
    %c0_4 = arith.constant 0 : index
    %c0_5 = arith.constant 0 : index
    %17 = vector.load %arg1[%c0_4, %c0_5] : memref<4x32xf32, #tpu.memory_space<vmem>>, vector<4x32xf32>
    %c0_6 = arith.constant 0 : index
    %c0_7 = arith.constant 0 : index
    %18 = vector.load %arg4[%c0_6, %c0_7] : memref<32x128xf32, #tpu.memory_space<vmem>>, vector<32x128xf32>
    %cst = arith.constant dense<0.000000e+00> : vector<4x128xf32>
    %19 = tpu.matmul %17, %18, %cst {dimension_numbers = #tpu.dot_dimension_numbers<[1], [0], [0], [1], [0, 0, 1, 1], [], []>} : vector<4x32xf32>, vector<32x128xf32>, vector<4x128xf32> -> vector<4x128xf32>
    %c0_8 = arith.constant 0 : index
    %c0_9 = arith.constant 0 : index
    %20 = vector.load %arg5[%c0_8, %c0_9] : memref<8x128xf32, #tpu.memory_space<vmem>>, vector<8x128xf32>
    %cst_10 = arith.constant dense<0.000000e+00> : vector<4x128xf32>
    %21 = tpu.matmul %16, %20, %cst_10 {dimension_numbers = #tpu.dot_dimension_numbers<[1], [0], [0], [1], [0, 0, 1, 1], [], []>} : vector<4x8xf32>, vector<8x128xf32>, vector<4x128xf32> -> vector<4x128xf32>
    %22 = arith.addf %19, %21 : vector<4x128xf32>
    %cst_11 = arith.constant 0.000000e+00 : f32
    %23 = vector.broadcast %cst_11 : f32 to vector<4x128xf32>
    %24 = arith.maximumf %22, %23 : vector<4x128xf32>
    %c0_12 = arith.constant 0 : index
    %c0_13 = arith.constant 0 : index
    %25 = vector.load %arg6[%c0_12, %c0_13] : memref<4x128xf32, #tpu.memory_space<vmem>>, vector<4x128xf32>
    tpu.vector_store %arg6[%c0_12, %c0_13], %24 {strides = array<i32>} : memref<4x128xf32, #tpu.memory_space<vmem>>, vector<4x128xf32>,
    return
  }
  func.func @transform_0(%arg0: i32) -> (i32, i32) {
    %c0_i32 = arith.constant 0 : i32
    %c0_i32_0 = arith.constant 0 : i32
    return %arg0, %c0_i32 : i32, i32
  }
  func.func @transform_1(%arg0: i32) -> (i32, i32) {
    %c0_i32 = arith.constant 0 : i32
    %c0_i32_0 = arith.constant 0 : i32
    %c0_i32_1 = arith.constant 0 : i32
    return %c0_i32, %c0_i32_0 : i32, i32
  }
  func.func @transform_2(%arg0: i32) -> (i32, i32) {
    %c0_i32 = arith.constant 0 : i32
    %c0_i32_0 = arith.constant 0 : i32
    %c0_i32_1 = arith.constant 0 : i32
    return %c0_i32, %c0_i32_0 : i32, i32
  }
  func.func @transform_3(%arg0: i32) -> (i32, i32) {
    %c0_i32 = arith.constant 0 : i32
    %c0_i32_0 = arith.constant 0 : i32
    %c0_i32_1 = arith.constant 0 : i32
    return %c0_i32, %c0_i32_0 : i32, i32
  }
  func.func @transform_4(%arg0: i32) -> (i32, i32) {
    %c0_i32 = arith.constant 0 : i32
    %c0_i32_0 = arith.constant 0 : i32
    %c0_i32_1 = arith.constant 0 : i32
    return %c0_i32, %c0_i32_0 : i32, i32
  }
  func.func @transform_5(%arg0: i32) -> (i32, i32) {
    %c0_i32 = arith.constant 0 : i32
    %c0_i32_0 = arith.constant 0 : i32
    return %arg0, %c0_i32 : i32, i32
  }
}

</mosaic_0001>

<bundles_post_ra>
// kernel: tpu_custom_call.1
= control target key start
LH: loop header
LB: loop body
LE: loop exit
PB: predicated region body
PF: predicated region fallthrough
CT: control target
= control target key end

     0   :  { %10 = vsyncpa [#allocation3], 0  ;;  %s445_s0 = inlined_call_operand.hbm [shape: f32[4,32], index: 0, kind: input, shape index: {}]   ;;  %s446_s1 = inlined_call_operand.vmem [shape: s32[1,8], index: 1, kind: input, shape index: {}]   ;;  %s447_s2 = inlined_call_operand.vmem [shape: s32[1,8], index: 2, kind: input, shape index: {}]   ;;  %s448_s3 = inlined_call_operand.hbm [shape: f32[32,128], index: 3, kind: input, shape index: {}]   ;;  %s449_s4 = inlined_call_operand.vmem [shape: f32[8,128], index: 4, kind: input, shape index: {}]   ;;  %s450_s5 = inlined_call_operand.hbm [shape: f32[4,128], index: 5, kind: output, shape index: {}]  }
   0x1   :  { %11 = vsyncpa [#allocation6], 0 }
   0x2   :  { %12 = vsyncpa [#allocation4], 0  ;;  %s355_s18 = smov [#allocation2]   ;;  %s356_s20 = smov [#allocation5]  }
   0x3   :  { %s19_s19 = sshll.u32 %s355_s18, 4  ;;  %s32_s21 = sshll.u32 %s356_s20, 4  ;;  %s20_s19 = int_to_ptr.vmem [resolvable:$true] %s19_s19  ;;  %s393_s21 = int_to_ptr.vmem [resolvable:$true] %s32_s21 }
   0x4   :  { %s283_s24 = scalar_lea.hbm %s445_s0, 64 }
   0x5   :  { %p284_p0 = scmp.ne.s32.totalorder %s445_s0, %s283_s24  ;;  %p287_p1 = scmp.lt.u32.totalorder %s283_s24, %s445_s0 }
   0x7   :  { %p289_p2 = pnand %p287_p1, %p284_p0 }
   0x9   :  { %292 = shalt.err (!%p289_p2)
}
   0xa   :  { %s293_s29 = scalar_lea.vmem %s20_s19, 64  ;;  %p298_p4 = scmp.lt.s32.totalorder %s20_s19, %s20_s19 }
   0xb   :  { %p294_p3 = scmp.ne.s32.totalorder %s20_s19, %s293_s29  ;;  %p299_p5 = scmp.lt.s32.totalorder %s293_s29, %s293_s29 }
   0xd   :  { %p300_p6 = por %p299_p5, %p298_p4 }
   0xf   :  { %p301_p7 = pnand %p300_p6, %p294_p3 }
  0x11   :  { %304 = shalt.err (!%p301_p7)
}
  0x12   :  { %22 = dma.hbm_to_vmem [thread:$0]  %s445_s0, 64, %s20_s19, [#allocation3]  }
  0x13   :  { %s305_s9 = scalar_lea.hbm %s448_s3, 512 }
  0x14   :  { %p306_p8 = scmp.ne.s32.totalorder %s448_s3, %s305_s9  ;;  %p309_p9 = scmp.lt.u32.totalorder %s305_s9, %s448_s3 }
  0x16   :  { %p311_p10 = pnand %p309_p9, %p306_p8 }
  0x18   :  { %314 = shalt.err (!%p311_p10)
}
  0x19   :  { %s315_s14 = scalar_lea.vmem %s393_s21, 512  ;;  %p320_p12 = scmp.lt.s32.totalorder %s393_s21, %s393_s21 }
  0x1a   :  { %p316_p11 = scmp.ne.s32.totalorder %s393_s21, %s315_s14  ;;  %p321_p13 = scmp.lt.s32.totalorder %s315_s14, %s315_s14 }
  0x1c   :  { %p322_p0 = por %p321_p13, %p320_p12 }
  0x1e   :  { %p323_p1 = pnand %p322_p0, %p316_p11 }
  0x20   :  { %326 = shalt.err (!%p323_p1)
}
  0x21   :  { %s357_s0 = smov 128   ;;  %s358_s15 = smov 8  }
  0x22   :  { %38 = dma.hbm_to_vmem [thread:$0]  %s448_s3, 512, %s393_s21, [#allocation6], %s357_s0, %s357_s0, %s358_s15  }
  0x23   :  { %349 = dma.done.wait [#allocation3], 64  }
  0x24   :  { %350 = vsyncadd [#allocation3], 4294967232 }
  0x25   :  { %351 = dma.done.wait [#allocation6], 512  }
  0x26   :  { %352 = vsyncadd [#allocation6], 4294966784  ;;  %v48_v0 = vlaneseq  ;;  %v359_v1 = vmov 0.0|0.0   ;;  %v360_v2 = vmov 0.0   ;;  %vm361_vm0 = vmmov 0   ;;  %v69_v5 = vld [vmem:[#allocation5] sm:$0xff] }
  0x27   :  { %268 = vmatprep.subr.bf16.mxu0 %v359_v1  ;;  %252 = vmatprep.subr.mxu1 %v360_v2  ;;  %v70_v6 = vld [vmem:[#allocation5 + $0x8] sm:$0xff]  ;;  %v71_v7 = vld [vmem:[#allocation5 + $0x10] sm:$0xff]  ;;  %v72_v9 = vld [vmem:[#allocation5 + $0x18] sm:$0xff]  ;;  %vm74_vm3 = vcmask 64512   ;;  %vm148_vm5 = vcmask 261120  }
  0x28   :  { %254 = vmatprep.mubr.msk.f32.mxu1 %vm361_vm0, %v360_v2  ;;  %v49_v3 = vshrl.u32 %v48_v0, 7  ;;  %265 = vmatprep.mubr.msk.f32.mxu0 %vm361_vm0, %v360_v2  ;;  %v269_v8 = vpack.c.bf16 %v70_v6, %v69_v5  ;;  %v73_v10 = vld [vmem:[%s449_s4] sm:$0xff]  ;;  %v272_v13 = vpack.c.bf16 %v72_v9, %v71_v7  ;;  %v68_v15 = vld [vmem:[#allocation2] sm:$0xf] }
  0x29   :  { %v240_v11 = vld [vmem:[%s446_s1] ss:$0 sm:$0xff]  ;;  %253 = vmatpush3.msra.mxu1 %v73_v10  ;;  %s362_s1 = smov [#allocation7]  }
  0x2a   :  { %v52_v4 = vmul.u32 4, %v49_v3  ;;  %v241_v12 = vld [vmem:[%s447_s2] ss:$0 sm:$0xff]  ;;  %270 = vmatpush3.bf16.msra.mxu0 %v269_v8  ;;  %s230_s4 = sshll.u32 %s362_s1, 4  ;;  %s231_s4 = int_to_ptr.vmem [resolvable:$true] %s230_s4 }
  0x2b   :  { %271 = vmatprep.subr.bf16.mxu0 %v359_v1  ;;  %s327_s2 = scalar_lea.vmem %s231_s4, 64  ;;  %p332_p3 = scmp.lt.s32.totalorder %s231_s4, %s231_s4 }
  0x2c   :  { %vm58_vm1 = vcmp.ge.s32.totalorder %v52_v4, %v240_v11  ;;  %vm64_vm2 = vcmp.lt.s32.totalorder %v52_v4, %v241_v12  ;;  %p328_p2 = scmp.ne.s32.totalorder %s231_s4, %s327_s2  ;;  %p333_p4 = scmp.lt.s32.totalorder %s327_s2, %s327_s2 }
  0x2d   :  { %vm65_vm4 = vmand %vm58_vm1, %vm64_vm2 }
  0x2e   :  { %v242_v14 = vsel %vm65_vm4, 1.0, %v360_v2  ;;  %273 = vmatpush3.bf16.msra.mxu0 %v272_v13  ;;  %p334_p5 = por %p333_p4, %p332_p3 }
  0x2f   :  { %255 = vmatmul.mubr.msk.f32.vlgmr.msra.gmra.mrb[0].mxu1 %vm74_vm3, %v242_v14 }
  0x30   :  { %p335_p6 = pnand %p334_p5, %p328_p2 }
  0x31   :  { %266 = vmatmul.mubr.msk.f32.vlgmr.msra.gmra.mrb[0].mxu0 %vm148_vm5, %v68_v15 }
 0x102   :  { %v144_v16 = vpop.f32.mrb[0].mxu1 }
 0x103   :  { %v256_v17 = vpop.f32.mrb[1].mxu1 }
 0x104   :  { %v218_v18 = vpop.f32.mrb[0].mxu0 }
 0x105   :  { %v219_v19 = vadd.f32 %v218_v18, %v144_v16  ;;  %v267_v20 = vpop.f32.mrb[1].mxu0 }
 0x107   :  { %v222_v21 = vmax.f32 %v219_v19, 0.0 }
 0x109   :  { %223 = vst [vmem:[#allocation7] sm:$0xf] %v222_v21 }
 0x10a   :  { %338 = shalt.err (!%p335_p6)
}
 0x10b   :  { %s339_s25 = scalar_lea.hbm %s450_s5, 64 }
 0x10c   :  { %p340_p7 = scmp.ne.s32.totalorder %s450_s5, %s339_s25  ;;  %p343_p8 = scmp.lt.u32.totalorder %s339_s25, %s450_s5 }
 0x10e   :  { %p345_p9 = pnand %p343_p8, %p340_p7 }
 0x110   :  { %348 = shalt.err (!%p345_p9)
}
 0x111   :  { %233 = dma.vmem_to_hbm [thread:$0]  %s231_s4, 64, %s450_s5, [#allocation4]  }
 0x112   :  { %353 = dma.done.wait [#allocation4], 64  }
 0x113   :  { %354 = vsyncadd [#allocation4], 4294967232 }
 0x114   :  { %237 = vsyncpa [#allocation3], 1 }
 0x115   :  { %238 = vsyncpa [#allocation6], 1 }
 0x116   :  { %239 = vsyncpa [#allocation4], 1 }

</bundles_post_ra>
